<compile_context>
chip_gen: v6e
topology: v6e:2x2x1
jax: 0.10.0
libtpu: 0.0.40
codegen_flags: <defaults>
</compile_context>

<pallas_src>
import functools

import jax
import jax.numpy as jnp
from jax.experimental import pallas as pl
from jax.experimental.pallas import tpu as pltpu


# ----------------------------- plain-JAX glue ------------------------------ #

def _bilinear_resize_nchw(img, out_h, out_w):
    """Matches torch.nn.functional.interpolate(mode='bilinear', align_corners=False)."""
    n, c, in_h, in_w = img.shape
    img = img.astype(jnp.float32)

    def src_coords(out_size, in_size):
        scale = in_size / out_size
        dst = jnp.arange(out_size, dtype=jnp.float32)
        src = (dst + 0.5) * scale - 0.5
        src = jnp.clip(src, 0.0, None)
        i0 = jnp.minimum(jnp.floor(src).astype(jnp.int32), in_size - 1)
        i1 = jnp.minimum(i0 + 1, in_size - 1)
        frac = src - i0.astype(jnp.float32)
        return i0, i1, frac

    h0, h1, fh = src_coords(out_h, in_h)
    w0, w1, fw = src_coords(out_w, in_w)

    top = img[:, :, h0, :]
    bot = img[:, :, h1, :]
    tl, tr = top[:, :, :, w0], top[:, :, :, w1]
    bl, br = bot[:, :, :, w0], bot[:, :, :, w1]

    fw_ = fw[None, None, None, :]
    fh_ = fh[None, None, :, None]
    top_i = tl * (1.0 - fw_) + tr * fw_
    bot_i = bl * (1.0 - fw_) + br * fw_
    return top_i * (1.0 - fh_) + bot_i * fh_


def _nearest_resize_nchw(img, out_h, out_w):
    """Matches torch.nn.functional.interpolate(mode='nearest') for integer ratios."""
    n, c, in_h, in_w = img.shape
    hi = jnp.minimum((jnp.arange(out_h) * in_h) // out_h, in_h - 1).astype(jnp.int32)
    wi = jnp.minimum((jnp.arange(out_w) * in_w) // out_w, in_w - 1).astype(jnp.int32)
    return img[:, :, hi, :][:, :, :, wi]


def _tensorcores_per_chip():
    """Best-effort count of TensorCores a single Pallas grid can shard across."""
    try:
        kind = jax.devices()[0].device_kind.lower()
    except Exception:
        return 1
    # v7x has 2 TensorCores per chip; v4 / v5p expose a 2-TC megacore.
    for tag in ("v7", "v5p", "v4"):
        if tag in kind:
            return 2
    return 1


# ------------------------------ Pallas kernel ------------------------------ #

def _conv3x3_instnorm_kernel(patches_ref, w_ref, o_ref, *, eps, bn):
    """Fused 3x3 conv (one im2col matmul) + InstanceNorm2d(affine=False).

    patches_ref: (bn, Kp, HW) bf16  im2col patches, Kp = 9*Cin padded to 128
    w_ref:       (Cout, Kp)   bf16  conv weights, pre-flattened / transposed / padded
    o_ref:       (bn, Cout, HW)     normalized output, NCHW-flat (lane-dense)
    """
    w = w_ref[...]                                                     # (Cout, Kp) bf16
    for i in range(bn):                                                # static unroll
        # Single MXU matmul per sample, f32 accumulation.
        acc = jnp.dot(w, patches_ref[i], preferred_element_type=jnp.float32)

        # Conv bias intentionally omitted: InstanceNorm(affine=False) subtracts
        # the per-channel mean right after, so a per-channel constant cancels.

        mean = jnp.mean(acc, axis=1, keepdims=True)                    # (Cout, 1)
        centered = acc - mean
        var = jnp.mean(centered * centered, axis=1, keepdims=True)     # biased var
        o_ref[i] = (centered * jax.lax.rsqrt(var + eps)).astype(o_ref.dtype)


# -------------------------------- wrapper ---------------------------------- #

def no_norm_forward(x, segmap, retrieval_image, conv_weight, conv_bias=None, eps=1e-5):
    """x, segmap, retrieval_image are NCHW (PyTorch convention). Returns NCHW.

    conv_weight is HWIO (3, 3, Cin, Cout). conv_bias is accepted for interface
    parity but is mathematically cancelled by the affine-free InstanceNorm.
    """
    del conv_bias  # cancelled exactly by the per-channel mean subtraction
    N, _, H, W = x.shape
    compute_dtype = jnp.bfloat16

    retrieval = _bilinear_resize_nchw(retrieval_image, H, W)
    seg = _nearest_resize_nchw(segmap, H, W)
    cat = jnp.concatenate([x.astype(compute_dtype),
                           seg.astype(compute_dtype),
                           retrieval.astype(compute_dtype)], axis=1)     # (N, Cin, H, W)

    Cin = cat.shape[1]
    Cout = conv_weight.shape[-1]
    HW = H * W
    K = 9 * Cin
    Kp = ((K + 127) // 128) * 128        # pad contraction dim to a full MXU granule

    # Channels-major zero padding + im2col: (N, 9*Cin, H*W), spatial axis last.
    x_pad = jnp.pad(cat, ((0, 0), (0, 0), (1, 1), (1, 1)))              # (N, Cin, H+2, W+2)
    patch_list = []
    for dh in range(3):
        for dw in range(3):
            patch_list.append(
                x_pad[:, :, dh:dh + H, dw:dw + W].reshape(N, Cin, HW))
    patches = jnp.concatenate(patch_list, axis=1)                       # (N, K, HW) bf16
    patches = jnp.pad(patches, ((0, 0), (0, Kp - K), (0, 0)))           # (N, Kp, HW)

    # Flatten HWIO weight to (K, Cout) with matching (dh, dw, cin) row ordering,
    # transpose to (Cout, K), cast to bf16, zero-pad contraction dim to Kp.
    w_flat = conv_weight.reshape(K, Cout).T.astype(compute_dtype)       # (Cout, K)
    w_flat = jnp.pad(w_flat, ((0, 0), (0, Kp - K)))                     # (Cout, Kp)

    # Single grid step with an in-kernel unrolled batch loop on single-TC parts
    # (v5e/v6e); one sample per grid step on multi-TC parts (v7x / megacore).
    bn = N if _tensorcores_per_chip() < 2 else 1
    if N % bn:
        bn = 1
    grid = (N // bn,)

    out_dtype = x.dtype
    cost = pl.CostEstimate(
        flops=2 * N * Cout * Kp * HW + 6 * N * Cout * HW,
        transcendentals=N * Cout,
        bytes_accessed=(2 * (N * Kp * HW + Cout * Kp)
                        + jnp.dtype(out_dtype).itemsize * N * Cout * HW),
    )

    kernel = functools.partial(_conv3x3_instnorm_kernel, eps=eps, bn=bn)

    out_flat = pl.pallas_call(
        kernel,
        out_shape=jax.ShapeDtypeStruct((N, Cout, HW), out_dtype),
        grid_spec=pl.GridSpec(
            grid=grid,
            in_specs=[
                pl.BlockSpec((bn, Kp, HW), lambda n: (n, 0, 0)),
                pl.BlockSpec((Cout, Kp), lambda n: (0, 0)),
            ],
            out_specs=pl.BlockSpec((bn, Cout, HW), lambda n: (n, 0, 0)),
        ),
        compiler_params=pltpu.CompilerParams(dimension_semantics=("parallel",)),
        cost_estimate=cost,
    )(patches, w_flat)

    return out_flat.reshape(N, Cout, H, W)                              # free reshape, NCHW


# --------------------------- pure-JAX reference ----------------------------- #

def _reference(x, segmap, retrieval_image, conv_weight, conv_bias, eps=1e-5):
    N, _, H, W = x.shape
    retrieval = _bilinear_resize_nchw(retrieval_image, H, W).astype(jnp.float32)
    seg = _nearest_resize_nchw(segmap, H, W).astype(jnp.float32)
    cat = jnp.concatenate([x.astype(jnp.float32), seg, retrieval], axis=1)
    y = jax.lax.conv_general_dilated(
        cat, conv_weight.astype(jnp.float32),
        window_strides=(1, 1), padding=((1, 1), (1, 1)),
        dimension_numbers=("NCHW", "HWIO", "NCHW"))
    y = y + conv_bias[None, :, None, None]
    mean = y.mean(axis=(2, 3), keepdims=True)
    var = ((y - mean) ** 2).mean(axis=(2, 3), keepdims=True)
    return (y - mean) * jax.lax.rsqrt(var + eps)


# ---------------------------------- main ------------------------------------ #

if __name__ == "__main__":
    # Module config: 'spadeinstance3x3', norm_nc=4, label_nc=4
    norm_nc, label_nc = 4, 4
    N, H, W = 2, 16, 16
    Cin = norm_nc + label_nc + 3          # 11
    Cout = norm_nc                        # 4
    ks = 3

    key = jax.random.PRNGKey(0)
    kx, ks_, kr, kw, kb = jax.random.split(key, 5)

    x = jax.random.normal(kx, (N, norm_nc, H, W), dtype=jnp.float32)
    segmap = jax.random.normal(ks_, (N, label_nc, 8, 8), dtype=jnp.float32)
    retrieval = jax.random.normal(kr, (N, 3, 8, 8), dtype=jnp.float32)

    # Deterministic Conv2d-style init (uniform +- 1/sqrt(fan_in)); weights in HWIO.
    # (Real PyTorch checkpoints store OIHW -> transpose (2,3,1,0) before calling.)
    bound = 1.0 / jnp.sqrt(jnp.float32(Cin * ks * ks))
    conv_weight = jax.random.uniform(
        kw, (ks, ks, Cin, Cout), dtype=jnp.float32, minval=-bound, maxval=bound)
    conv_bias = jax.random.uniform(
        kb, (Cout,), dtype=jnp.float32, minval=-bound, maxval=bound)

    out = no_norm_forward(x, segmap, retrieval, conv_weight, conv_bias)
    out = jax.block_until_ready(out)
    assert out.shape == (N, norm_nc, H, W), out.shape

    # Sanity check vs. f32 reference (bf16 MXU inputs, f32 accumulate).
    ref = _reference(x, segmap, retrieval, conv_weight, conv_bias)
    max_err = float(jnp.max(jnp.abs(out.astype(jnp.float32) - ref)))
    assert max_err < 5e-2, f"max abs error {max_err}"

    print("KERNEL_OK")
</pallas_src>

<mosaic_0001>
module attributes {stable_mosaic.version = 11 : i64} {
  func.func @_conv3x3_instnorm_kernel(%arg0: i32, %arg1: memref<2x128x256xbf16, #tpu.memory_space<vmem>>, %arg2: memref<4x128xbf16, #tpu.memory_space<vmem>>, %arg3: memref<2x4x256xf32, #tpu.memory_space<vmem>>) attributes {dimension_semantics = [#tpu.dimension_semantics<parallel>], iteration_bounds = array<i64: 1>, scalar_prefetch = 0 : i64, scratch_operands = 0 : i64, tpu.core_type = #tpu.core_type<tc>, window_params = [{transform_indices = @transform_0, window_bounds = array<i64: 2, 128, 256>}, {pipeline_mode = #tpu.pipeline_mode<synchronous>, transform_indices = @transform_1, window_bounds = array<i64: 4, 128>}, {transform_indices = @transform_2, window_bounds = array<i64: 2, 4, 256>}]} {
    %c0 = arith.constant 0 : index
    %c0_0 = arith.constant 0 : index
    %0 = vector.load %arg2[%c0, %c0_0] : memref<4x128xbf16, #tpu.memory_space<vmem>>, vector<4x128xbf16>
    %c0_1 = arith.constant 0 : index
    %c0_2 = arith.constant 0 : index
    %c0_3 = arith.constant 0 : index
    %1 = vector.load %arg1[%c0_1, %c0_2, %c0_3] : memref<2x128x256xbf16, #tpu.memory_space<vmem>>, vector<1x128x256xbf16>
    %2 = vector.shape_cast %1 : vector<1x128x256xbf16> to vector<128x256xbf16>
    %cst = arith.constant dense<0.000000e+00> : vector<4x256xf32>
    %3 = tpu.matmul %0, %2, %cst {dimension_numbers = #tpu.dot_dimension_numbers<[1], [0], [0], [1], [0, 0, 1, 1], [], []>} : vector<4x128xbf16>, vector<128x256xbf16>, vector<4x256xf32> -> vector<4x256xf32>
    %cst_4 = arith.constant dense<0.000000e+00> : vector<4xf32>
    %4 = vector.multi_reduction <add>, %3, %cst_4 [1] : vector<4x256xf32> to vector<4xf32>
    %5 = vector.shape_cast %4 : vector<4xf32> to vector<4x1xf32>
    %cst_5 = arith.constant 2.560000e+02 : f32
    %6 = vector.broadcast %cst_5 : f32 to vector<4x1xf32>
    %7 = arith.divf %5, %6 : vector<4x1xf32>
    %8 = vector.broadcast %7 : vector<4x1xf32> to vector<4x256xf32>
    %9 = arith.subf %3, %8 : vector<4x256xf32>
    %10 = arith.mulf %9, %9 : vector<4x256xf32>
    %cst_6 = arith.constant dense<0.000000e+00> : vector<4xf32>
    %11 = vector.multi_reduction <add>, %10, %cst_6 [1] : vector<4x256xf32> to vector<4xf32>
    %12 = vector.shape_cast %11 : vector<4xf32> to vector<4x1xf32>
    %cst_7 = arith.constant 2.560000e+02 : f32
    %13 = vector.broadcast %cst_7 : f32 to vector<4x1xf32>
    %14 = arith.divf %12, %13 : vector<4x1xf32>
    %cst_8 = arith.constant 9.99999974E-6 : f32
    %15 = vector.broadcast %cst_8 : f32 to vector<4x1xf32>
    %16 = arith.addf %14, %15 : vector<4x1xf32>
    %17 = math.rsqrt %16 : vector<4x1xf32>
    %18 = vector.broadcast %17 : vector<4x1xf32> to vector<4x256xf32>
    %19 = arith.mulf %9, %18 : vector<4x256xf32>
    %c0_9 = arith.constant 0 : index
    %c0_10 = arith.constant 0 : index
    %c0_11 = arith.constant 0 : index
    %20 = vector.load %arg3[%c0_9, %c0_10, %c0_11] : memref<2x4x256xf32, #tpu.memory_space<vmem>>, vector<1x4x256xf32>
    %21 = vector.shape_cast %20 : vector<1x4x256xf32> to vector<4x256xf32>
    %22 = vector.shape_cast %19 : vector<4x256xf32> to vector<1x4x256xf32>
    tpu.vector_store %arg3[%c0_9, %c0_10, %c0_11], %22 {strides = array<i32>} : memref<2x4x256xf32, #tpu.memory_space<vmem>>, vector<1x4x256xf32>,
    %c1 = arith.constant 1 : index
    %c0_12 = arith.constant 0 : index
    %c0_13 = arith.constant 0 : index
    %23 = vector.load %arg1[%c1, %c0_12, %c0_13] : memref<2x128x256xbf16, #tpu.memory_space<vmem>>, vector<1x128x256xbf16>
    %24 = vector.shape_cast %23 : vector<1x128x256xbf16> to vector<128x256xbf16>
    %cst_14 = arith.constant dense<0.000000e+00> : vector<4x256xf32>
    %25 = tpu.matmul %0, %24, %cst_14 {dimension_numbers = #tpu.dot_dimension_numbers<[1], [0], [0], [1], [0, 0, 1, 1], [], []>} : vector<4x128xbf16>, vector<128x256xbf16>, vector<4x256xf32> -> vector<4x256xf32>
    %cst_15 = arith.constant dense<0.000000e+00> : vector<4xf32>
    %26 = vector.multi_reduction <add>, %25, %cst_15 [1] : vector<4x256xf32> to vector<4xf32>
    %27 = vector.shape_cast %26 : vector<4xf32> to vector<4x1xf32>
    %cst_16 = arith.constant 2.560000e+02 : f32
    %28 = vector.broadcast %cst_16 : f32 to vector<4x1xf32>
    %29 = arith.divf %27, %28 : vector<4x1xf32>
    %30 = vector.broadcast %29 : vector<4x1xf32> to vector<4x256xf32>
    %31 = arith.subf %25, %30 : vector<4x256xf32>
    %32 = arith.mulf %31, %31 : vector<4x256xf32>
    %cst_17 = arith.constant dense<0.000000e+00> : vector<4xf32>
    %33 = vector.multi_reduction <add>, %32, %cst_17 [1] : vector<4x256xf32> to vector<4xf32>
    %34 = vector.shape_cast %33 : vector<4xf32> to vector<4x1xf32>
    %cst_18 = arith.constant 2.560000e+02 : f32
    %35 = vector.broadcast %cst_18 : f32 to vector<4x1xf32>
    %36 = arith.divf %34, %35 : vector<4x1xf32>
    %cst_19 = arith.constant 9.99999974E-6 : f32
    %37 = vector.broadcast %cst_19 : f32 to vector<4x1xf32>
    %38 = arith.addf %36, %37 : vector<4x1xf32>
    %39 = math.rsqrt %38 : vector<4x1xf32>
    %40 = vector.broadcast %39 : vector<4x1xf32> to vector<4x256xf32>
    %41 = arith.mulf %31, %40 : vector<4x256xf32>
    %c1_20 = arith.constant 1 : index
    %c0_21 = arith.constant 0 : index
    %c0_22 = arith.constant 0 : index
    %42 = vector.load %arg3[%c1_20, %c0_21, %c0_22] : memref<2x4x256xf32, #tpu.memory_space<vmem>>, vector<1x4x256xf32>
    %43 = vector.shape_cast %42 : vector<1x4x256xf32> to vector<4x256xf32>
    %44 = vector.shape_cast %41 : vector<4x256xf32> to vector<1x4x256xf32>
    tpu.vector_store %arg3[%c1_20, %c0_21, %c0_22], %44 {strides = array<i32>} : memref<2x4x256xf32, #tpu.memory_space<vmem>>, vector<1x4x256xf32>,
    return
  }
  func.func @transform_0(%arg0: i32) -> (i32, i32, i32) {
    %c0_i32 = arith.constant 0 : i32
    %c0_i32_0 = arith.constant 0 : i32
    %c0_i32_1 = arith.constant 0 : i32
    return %arg0, %c0_i32, %c0_i32_0 : i32, i32, i32
  }
  func.func @transform_1(%arg0: i32) -> (i32, i32) {
    %c0_i32 = arith.constant 0 : i32
    %c0_i32_0 = arith.constant 0 : i32
    %c0_i32_1 = arith.constant 0 : i32
    return %c0_i32, %c0_i32_0 : i32, i32
  }
  func.func @transform_2(%arg0: i32) -> (i32, i32, i32) {
    %c0_i32 = arith.constant 0 : i32
    %c0_i32_0 = arith.constant 0 : i32
    %c0_i32_1 = arith.constant 0 : i32
    return %arg0, %c0_i32, %c0_i32_0 : i32, i32, i32
  }
}

</mosaic_0001>

<bundles_post_ra>
// kernel: tpu_custom_call.1
= control target key start
LH: loop header
LB: loop body
LE: loop exit
PB: predicated region body
PF: predicated region fallthrough
CT: control target
= control target key end

     0   :  { %7 = vsyncpa [#allocation3], 0  ;;  %s586_s0 = inlined_call_operand.hbm [shape: bf16[2,128,256], index: 0, kind: input, shape index: {}]   ;;  %s587_s1 = inlined_call_operand.hbm [shape: bf16[4,128], index: 1, kind: input, shape index: {}]   ;;  %s588_s2 = inlined_call_operand.hbm [shape: f32[2,4,256], index: 2, kind: output, shape index: {}]  }
   0x1   :  { %8 = vsyncpa [#allocation6], 0 }
   0x2   :  { %9 = vsyncpa [#allocation4], 0  ;;  %s542_s9 = smov [#allocation2]  }
   0x3   :  { %s15_s10 = sshll.u32 %s542_s9, 4  ;;  %s16_s10 = int_to_ptr.vmem [resolvable:$true] %s15_s10 }
   0x4   :  { %s484_s11 = scalar_lea.vmem %s16_s10, 4096  ;;  %p489_p1 = scmp.lt.s32.totalorder %s16_s10, %s16_s10 }
   0x5   :  { %p485_p0 = scmp.ne.s32.totalorder %s16_s10, %s484_s11  ;;  %p490_p2 = scmp.lt.s32.totalorder %s484_s11, %s484_s11 }
   0x7   :  { %p491_p3 = por %p490_p2, %p489_p1 }
   0x9   :  { %p492_p4 = pnand %p491_p3, %p485_p0 }
   0xb   :  { %495 = shalt.err (!%p492_p4)
}
   0xc   :  { %s543_s12 = smov 128   ;;  %s544_s13 = smov 8  }
   0xd   :  { %21 = dma.hbm_to_vmem [thread:$0]  %s586_s0, 4096, %s16_s10, [#allocation3], %s543_s12, %s543_s12, %s544_s13  }
   0xe   :  { %s545_s16 = smov [#allocation5]  }
   0xf   :  { %s28_s17 = sshll.u32 %s545_s16, 4  ;;  %s29_s17 = int_to_ptr.vmem [resolvable:$true] %s28_s17 }
  0x10   :  { %s504_s18 = scalar_lea.vmem %s29_s17, 32  ;;  %p509_p6 = scmp.lt.s32.totalorder %s29_s17, %s29_s17 }
  0x11   :  { %p505_p5 = scmp.ne.s32.totalorder %s29_s17, %s504_s18  ;;  %p510_p7 = scmp.lt.s32.totalorder %s504_s18, %s504_s18 }
  0x13   :  { %p511_p8 = por %p510_p7, %p509_p6 }
  0x15   :  { %p512_p9 = pnand %p511_p8, %p505_p5 }
  0x17   :  { %515 = shalt.err (!%p512_p9)
}
  0x18   :  { %31 = dma.hbm_to_vmem [thread:$0]  %s587_s1, 32, %s29_s17, [#allocation6]  }
  0x19   :  { %536 = dma.done.wait [#allocation3], 4096  }
  0x1a   :  { %537 = vsyncadd [#allocation3], 4294963200 }
  0x1b   :  { %538 = dma.done.wait [#allocation6], 32  }
  0x1c   :  { %539 = vsyncadd [#allocation6], 4294967264  ;;  %v546_v0 = vmov 0   ;;  %v424_v1 = vld [vmem:[#allocation2 + $0x74] ss:$8 sps:$4 sm:$0xff]   ;;  %vm177_vm0 = vcmask 1043456  }
  0x1d   :  { %168 = vmatprep.mubr.bf16.mxu0 %v546_v0  ;;  %333 = vmatprep.mubr.bf16.mxu1 %v546_v0  ;;  %v426_v2 = vld [vmem:[#allocation2 + $0xf4] ss:$8 sps:$4 sm:$0xff]   ;;  %v428_v3 = vld [vmem:[#allocation2 + $0x70] ss:$8 sps:$4 sm:$0xff]   ;;  %v430_v5 = vld [vmem:[#allocation2 + $0x64] ss:$8 sps:$4 sm:$0xff]  }
  0x1e   :  { %136 = vmatprep.subr.bf16.mxu0 %v424_v1  ;;  %v429_v4 = vld [vmem:[#allocation2 + $0xf0] ss:$8 sps:$4 sm:$0xff]   ;;  %301 = vmatprep.subr.bf16.mxu1 %v426_v2  ;;  %v432_v6 = vld [vmem:[#allocation2 + $0xe4] ss:$8 sps:$4 sm:$0xff]   ;;  %v434_v7 = vld [vmem:[#allocation2 + $0x60] ss:$8 sps:$4 sm:$0xff]  }
  0x1f   :  { %137 = vmatpush1.bf16.msra.mxu0 %v428_v3  ;;  %302 = vmatpush1.bf16.msra.mxu1 %v429_v4  ;;  %v435_v8 = vld [vmem:[#allocation2 + $0xe0] ss:$8 sps:$4 sm:$0xff]   ;;  %v436_v9 = vld [vmem:[#allocation2 + $0x54] ss:$8 sps:$4 sm:$0xff]   ;;  %v440_v11 = vld [vmem:[#allocation2 + $0x50] ss:$8 sps:$4 sm:$0xff]  }
  0x20   :  { %138 = vmatprep.subr.bf16.mxu0 %v430_v5  ;;  %303 = vmatprep.subr.bf16.mxu1 %v432_v6  ;;  %v438_v10 = vld [vmem:[#allocation2 + $0xd4] ss:$8 sps:$4 sm:$0xff]   ;;  %v441_v12 = vld [vmem:[#allocation2 + $0xd0] ss:$8 sps:$4 sm:$0xff]   ;;  %v442_v13 = vld [vmem:[#allocation2 + $0x44] ss:$8 sps:$4 sm:$0xff]  }
  0x21   :  { %v444_v14 = vld [vmem:[#allocation2 + $0xc4] ss:$8 sps:$4 sm:$0xff]   ;;  %v446_v15 = vld [vmem:[#allocation2 + $0x40] ss:$8 sps:$4 sm:$0xff]   ;;  %v448_v17 = vld [vmem:[#allocation2 + $0x34] ss:$8 sps:$4 sm:$0xff]  }
  0x22   :  { %v447_v16 = vld [vmem:[#allocation2 + $0xc0] ss:$8 sps:$4 sm:$0xff]   ;;  %v450_v18 = vld [vmem:[#allocation2 + $0xb4] ss:$8 sps:$4 sm:$0xff]   ;;  %v452_v19 = vld [vmem:[#allocation2 + $0x30] ss:$8 sps:$4 sm:$0xff]  }
  0x23   :  { %139 = vmatpush1.bf16.msra.mxu0 %v434_v7  ;;  %304 = vmatpush1.bf16.msra.mxu1 %v435_v8  ;;  %v453_v20 = vld [vmem:[#allocation2 + $0xb0] ss:$8 sps:$4 sm:$0xff]   ;;  %v454_v21 = vld [vmem:[#allocation2 + $0x24] ss:$8 sps:$4 sm:$0xff]   ;;  %v458_v23 = vld [vmem:[#allocation2 + $0x20] ss:$8 sps:$4 sm:$0xff]  }
  0x24   :  { %140 = vmatprep.subr.bf16.mxu0 %v436_v9  ;;  %305 = vmatprep.subr.bf16.mxu1 %v438_v10  ;;  %v456_v22 = vld [vmem:[#allocation2 + $0xa4] ss:$8 sps:$4 sm:$0xff]   ;;  %v459_v24 = vld [vmem:[#allocation2 + $0xa0] ss:$8 sps:$4 sm:$0xff]   ;;  %v460_v25 = vld [vmem:[#allocation2 + $0x14] ss:$8 sps:$4 sm:$0xff]  }
  0x25   :  { %v462_v26 = vld [vmem:[#allocation2 + $0x94] ss:$8 sps:$4 sm:$0xff]   ;;  %v464_v27 = vld [vmem:[#allocation2 + $0x10] ss:$8 sps:$4 sm:$0xff]   ;;  %v466_v29 = vld [vmem:[#allocation2 + $0x4] ss:$8 sps:$4 sm:$0xff]  }
  0x26   :  { %v465_v28 = vld [vmem:[#allocation2 + $0x90] ss:$8 sps:$4 sm:$0xff]   ;;  %v468_v30 = vld [vmem:[#allocation2 + $0x84] ss:$8 sps:$4 sm:$0xff]   ;;  %v470_v31 = vld [vmem:[#allocation2] ss:$8 sps:$4 sm:$0xff]  }
  0x27   :  { %141 = vmatpush1.bf16.msra.mxu0 %v440_v11  ;;  %306 = vmatpush1.bf16.msra.mxu1 %v441_v12  ;;  %v471_v32 = vld [vmem:[#allocation2 + $0x80] ss:$8 sps:$4 sm:$0xff]   ;;  %s547_s0 = smov [#allocation7]  }
  0x28   :  { %142 = vmatprep.subr.bf16.mxu0 %v442_v13  ;;  %307 = vmatprep.subr.bf16.mxu1 %v444_v14  ;;  %v39_v33 = vld [vmem:[#allocation5] sm:$0x3]  ;;  %s373_s1 = sshll.u32 %s547_s0, 4  ;;  %s374_s1 = int_to_ptr.vmem [resolvable:$true] %s373_s1 }
  0x29   :  { %s516_s21 = scalar_lea.vmem %s374_s1, 256  ;;  %p521_p11 = scmp.lt.s32.totalorder %s374_s1, %s374_s1 }
  0x2a   :  { %p517_p10 = scmp.ne.s32.totalorder %s374_s1, %s516_s21  ;;  %p522_p12 = scmp.lt.s32.totalorder %s516_s21, %s516_s21 }
  0x2b   :  { %143 = vmatpush1.bf16.msra.mxu0 %v446_v15  ;;  %308 = vmatpush1.bf16.msra.mxu1 %v447_v16 }
  0x2c   :  { %144 = vmatprep.subr.bf16.mxu0 %v448_v17  ;;  %309 = vmatprep.subr.bf16.mxu1 %v450_v18  ;;  %p523_p13 = por %p522_p12, %p521_p11 }
  0x2e   :  { %p524_p0 = pnand %p523_p13, %p517_p10 }
  0x2f   :  { %145 = vmatpush1.bf16.msra.mxu0 %v452_v19  ;;  %310 = vmatpush1.bf16.msra.mxu1 %v453_v20 }
  0x30   :  { %146 = vmatprep.subr.bf16.mxu0 %v454_v21  ;;  %311 = vmatprep.subr.bf16.mxu1 %v456_v22 }
  0x33   :  { %147 = vmatpush1.bf16.msra.mxu0 %v458_v23  ;;  %312 = vmatpush1.bf16.msra.mxu1 %v459_v24 }
  0x34   :  { %148 = vmatprep.subr.bf16.mxu0 %v460_v25  ;;  %313 = vmatprep.subr.bf16.mxu1 %v462_v26 }
  0x37   :  { %149 = vmatpush1.bf16.msra.mxu0 %v464_v27  ;;  %314 = vmatpush1.bf16.msra.mxu1 %v465_v28 }
  0x38   :  { %150 = vmatprep.subr.bf16.mxu0 %v466_v29  ;;  %315 = vmatprep.subr.bf16.mxu1 %v468_v30 }
  0x3b   :  { %151 = vmatpush1.bf16.msra.mxu0 %v470_v31  ;;  %316 = vmatpush1.bf16.msra.mxu1 %v471_v32 }
  0x3e   :  { %169 = vmatmul.mubr.bf16.vlgmr.msra.gmra.mxu0 %v39_v33  ;;  %334 = vmatmul.mubr.bf16.vlgmr.msra.gmra.mxu1 %v39_v33 }
  0xfe   :  { %v170_v34 = vpop.f32.mrf.mxu0  ;;  %v335_v35 = vpop.f32.mrf.mxu1 }
  0xff   :  { %v178_v38 = vsel %vm177_vm0, %v170_v34, 0.0  ;;  %v342_v43 = vsel %vm177_vm0, %v335_v35, 0.0 }
 0x100   :  { %v172_v36 = vpop.f32.mrf.mxu0  ;;  %v337_v37 = vpop.f32.mrf.mxu1 }
 0x101   :  { %v179_v39 = vsel %vm177_vm0, %v172_v36, 0.0  ;;  %v343_v44 = vsel %vm177_vm0, %v337_v37, 0.0 }
 0x102   :  { %v174_v40 = vpop.f32.mrf.mxu0  ;;  %v339_v41 = vpop.f32.mrf.mxu1  ;;  %v180_v42 = vadd.f32 %v179_v39, %v178_v38  ;;  %v344_v47 = vadd.f32 %v343_v44, %v342_v43 }
 0x104   :  { %v340_v45 = vpop.f32.mrf.mxu1  ;;  %181 = vadd.xlane.f32.xlu0 %v180_v42  ;;  %v175_v46 = vpop.f32.mrf.mxu0 }
 0x108   :  { %345 = vadd.xlane.f32.xlu0 %v344_v47 }
 0x18d   :  { %v182_v48 = vpop.xlane.xlu0 %181 }
 0x18e   :  { %v184_v49 = vmul.f32 0.00390625, %v182_v48 }
 0x190   :  { %v185_v50 = vsub.f32 %v170_v34, %v184_v49  ;;  %v186_v51 = vsub.f32 %v172_v36, %v184_v49 }
 0x191   :  { %v346_v52 = vpop.xlane.xlu0 %345 }
 0x192   :  { %v347_v53 = vmul.f32 0.00390625, %v346_v52  ;;  %v187_v54 = vmul.f32 %v185_v50, %v185_v50  ;;  %v188_v55 = vmul.f32 %v186_v51, %v186_v51 }
 0x194   :  { %v348_v56 = vsub.f32 %v335_v35, %v347_v53  ;;  %v349_v57 = vsub.f32 %v337_v37, %v347_v53  ;;  %v189_v58 = vsel %vm177_vm0, %v187_v54, 0.0  ;;  %v190_v59 = vsel %vm177_vm0, %v188_v55, 0.0 }
 0x195   :  { %v191_v60 = vadd.f32 %v190_v59, %v189_v58 }
 0x196   :  { %v350_v61 = vmul.f32 %v348_v56, %v348_v56  ;;  %v351_v62 = vmul.f32 %v349_v57, %v349_v57 }
 0x197   :  { %192 = vadd.xlane.f32.xlu1 %v191_v60 }
 0x198   :  { %v352_v63 = vsel %vm177_vm0, %v350_v61, 0.0  ;;  %v353_v0 = vsel %vm177_vm0, %v351_v62, 0.0 }
 0x199   :  { %v354_v1 = vadd.f32 %v353_v0, %v352_v63 }
 0x19b   :  { %355 = vadd.xlane.f32.xlu1 %v354_v1 }
 0x220   :  { %v193_v2 = vpop.xlane.xlu1 %192 }
 0x221   :  { %v194_v3 = vmul.f32 0.00390625, %v193_v2 }
 0x223   :  { %v195_v4 = vadd.f32 1e-05, %v194_v3 }
 0x224   :  { %v356_v5 = vpop.xlane.xlu1 %355 }
 0x225   :  { %472 = vrsqrt.f32 %v195_v4  ;;  %v357_v6 = vmul.f32 0.00390625, %v356_v5 }
 0x227   :  { %v358_v7 = vadd.f32 1e-05, %v357_v6 }
 0x229   :  { %474 = vrsqrt.f32 %v358_v7 }
 0x232   :  { %v473_v8 = vpop.eup %472 }
 0x233   :  { %v197_v9 = vmul.f32 %v473_v8, %v185_v50  ;;  %v198_v10 = vmul.f32 %v473_v8, %v186_v51 }
 0x235   :  { %v201_v11 = vcombine.low %v197_v9, %v198_v10 }
 0x236   :  { %v475_v12 = vpop.eup %474 }
 0x237   :  { %203 = vst [vmem:[#allocation7] sm:$0xff] %v201_v11  ;;  %v360_v13 = vmul.f32 %v475_v12, %v348_v56  ;;  %v361_v14 = vmul.f32 %v475_v12, %v349_v57 }
 0x239   :  { %v364_v15 = vcombine.low %v360_v13, %v361_v14 }
 0x23b   :  { %367 = vst [vmem:[#allocation7 + $0x8] sm:$0xff] %v364_v15 }
 0x23c   :  { %527 = shalt.err (!%p524_p0)
}
 0x23d   :  { %379 = dma.vmem_to_hbm [thread:$0]  %s374_s1, 256, %s588_s2, [#allocation4], %s543_s12, %s543_s12, %s544_s13  }
 0x23e   :  { %540 = dma.done.wait [#allocation4], 256  }
 0x23f   :  { %541 = vsyncadd [#allocation4], 4294967040 }
 0x240   :  { %383 = vsyncpa [#allocation3], 1 }
 0x241   :  { %384 = vsyncpa [#allocation6], 1 }
 0x242   :  { %385 = vsyncpa [#allocation4], 1 }

</bundles_post_ra>
